<compile_context>
chip_gen: v7x
topology: tpu7x:2x2x1
jax: 0.10.0
libtpu: 0.0.40
codegen_flags: <defaults>
</compile_context>

<pallas_src>
import functools
import math

import jax
import jax.numpy as jnp
from jax import lax
from jax.experimental import pallas as pl
from jax.experimental.pallas import tpu as pltpu


_LANE = 128
_SUBLANE = 8
# Above this many id-bytes, ids are streamed into SMEM per token block instead
# of keeping the whole array resident in (small, pow2-padded) SMEM.
_SMEM_WHOLE_IDS_BYTES = 32 * 1024


def _round_up(x, m):
    return ((x + m - 1) // m) * m


def _largest_divisor(n, cap):
    """Largest multiple of 8 that divides n (a multiple of 8) and is <= cap."""
    t = max(_SUBLANE, (min(cap, n) // _SUBLANE) * _SUBLANE)
    while t > _SUBLANE:
        if n % t == 0:
            return t
        t -= _SUBLANE
    return _SUBLANE


def _vmem_budget_bytes():
    """Generation-aware VMEM budget (~75% of physical VMEM per core)."""
    cap = 64 * 1024 * 1024  # conservative fallback (v7x-sized)
    try:
        cap = int(pltpu.get_tpu_info().vmem_capacity_bytes)
    except Exception:
        pass
    return (3 * cap) // 4


# --------------------------------------------------------------------------
# Kernels
# --------------------------------------------------------------------------

def _embed_onehot_kernel(ids_ref, table_ref, o_ref, *, scale):
    """Small-vocab path: gather == one-hot matmul on the MXU.

    ids_ref:   (T, 1) int32 token ids (VMEM block).
    table_ref: (n_token, d_chunk) table slab (VMEM resident).
    o_ref:     (T, d_chunk) output tile.
    """
    tok = ids_ref[...]                                      # (T, 1)
    n_token = table_ref.shape[0]
    t = o_ref.shape[0]
    # Exact one-hot (values 1.0) so the MXU result is a bit-exact row gather;
    # the sqrt(d_model) scale is fused on the register-resident dot result.
    onehot = (lax.broadcasted_iota(jnp.int32, (t, n_token), 1) == tok)
    onehot = onehot.astype(table_ref.dtype)
    out = jnp.dot(onehot, table_ref[...], preferred_element_type=jnp.float32)
    o_ref[...] = (out * jnp.float32(scale)).astype(o_ref.dtype)


def _embed_gather_kernel(ids_ref, table_ref, o_ref, *, scale, unroll,
                         ids_blocked, token_axis):
    """Resident-slab path: per-token row copy with the scale fused in.

    ids_ref:   token ids in SMEM; either a (T,) per-block window
               (ids_blocked=True) or the whole flat id array.
    table_ref: (n_token, d_chunk) table slab (VMEM resident).
    o_ref:     (T, d_chunk) output tile.
    """
    t = o_ref.shape[0]
    base = 0 if ids_blocked else pl.program_id(token_axis) * t
    s = jnp.asarray(scale, dtype=o_ref.dtype)

    def body(j, carry):
        tok = ids_ref[base + j]
        o_ref[pl.ds(j, 1), :] = table_ref[pl.ds(tok, 1), :].astype(o_ref.dtype) * s
        return carry

    # TODO(synk): pack 8 gathered rows per vreg (stride-0 sublane-broadcast
    # load + select) and issue one dense (8, d_chunk) store per group to cut
    # store-slot pressure ~8x (most valuable on v5e's single vst slot).
    lax.fori_loop(0, t, body, 0, unroll=unroll)


def _embed_dma_kernel(ids_ref, table_hbm, o_ref, rowbuf, sems, *, scale, nbuf,
                      ids_blocked):
    """Large-vocab / sparse-usage path: nbuf-deep multi-buffered HBM row gather.

    ids_ref:   token ids in SMEM (per-block window or whole array).
    table_hbm: (n_token, d_model) table left in HBM (pl.ANY).
    o_ref:     (T, d_model) output tile.
    rowbuf:    (nbuf, 1, d_model) VMEM landing buffers.
    sems:      (nbuf,) DMA semaphores.
    """
    t = o_ref.shape[0]                     # multiple of nbuf by construction
    base = 0 if ids_blocked else pl.program_id(0) * t
    s = jnp.asarray(scale, dtype=o_ref.dtype)

    def start(j, slot):
        tok = ids_ref[base + j]
        pltpu.make_async_copy(table_hbm.at[pl.ds(tok, 1), :],
                              rowbuf.at[slot], sems.at[slot]).start()

    # Prime the pipeline (static slots -> static addressing).
    for slot in range(nbuf):
        start(slot, slot)

    def group(g, carry):
        gbase = g * nbuf
        for slot in range(nbuf):           # static unroll over buffer slots
            j = gbase + slot
            pltpu.make_async_copy(table_hbm.at[pl.ds(0, 1), :],   # dummy src: wait only
                                  rowbuf.at[slot], sems.at[slot]).wait()
            o_ref[pl.ds(j, 1), :] = rowbuf[slot].astype(o_ref.dtype) * s

            @pl.when(j + nbuf < t)
            def _():
                start(j + nbuf, slot)
        return carry

    lax.fori_loop(0, t // nbuf, group, 0)


# --------------------------------------------------------------------------
# Wrapper
# --------------------------------------------------------------------------

def embeddings_forward(x, table, *, block_tokens=256, onehot_max_vocab=2048,
                       vmem_budget_bytes=None, force_path=None):
    """Forward pass of Embeddings: table[x] * sqrt(d_model)."""
    lead_shape = x.shape
    n_token, d_model = table.shape
    dtype = table.dtype
    itemsize = dtype.itemsize
    scale = float(math.sqrt(d_model))
    N = math.prod(lead_shape)

    if vmem_budget_bytes is None:
        vmem_budget_bytes = _vmem_budget_bytes()

    # ---- token-block size T: sublane-dense, preferably dividing N so no
    #      post-kernel slice copy of the output is needed.
    N_pad = _round_up(N, _SUBLANE)
    cap = max(_SUBLANE, (min(block_tokens, N_pad) // _SUBLANE) * _SUBLANE)
    T = _largest_divisor(N_pad, cap)
    if T < 64 and N_pad >= 256:
        # Awkward token count: prefer dense 128-token tiles and pay one small
        # tail pad + output slice instead of many tiny grid steps.
        T = min(cap, 128)
        N_pad = _round_up(N, T)

    # ---- path selection.
    min_cols = min(d_model, _LANE)
    resident_ok = (n_token + 2 * T) * min_cols * itemsize <= vmem_budget_bytes
    if force_path is not None:
        path = force_path
    elif not resident_ok:
        path = "dma"            # table slab cannot be made VMEM-resident
    elif n_token > 8 * N_pad:
        path = "dma"            # sparse usage: only fetch the rows we need
    elif n_token <= onehot_max_vocab:
        path = "onehot"         # small vocab: one-hot matmul on the MXU
    else:
        path = "gather"         # resident slab + per-row copy
    assert path in ("onehot", "gather", "dma"), path

    if path == "dma":
        # Keep the double-buffered output tile within budget for huge d_model.
        max_t = (vmem_budget_bytes // (4 * d_model * itemsize) // _SUBLANE) * _SUBLANE
        if 0 < max_t < T:
            T = _largest_divisor(N_pad, max_t)

    num_blocks = N_pad // T

    flat_idx = x.reshape(N).astype(jnp.int32)
    if N_pad != N:
        flat_idx = jnp.concatenate([flat_idx, jnp.zeros((N_pad - N,), jnp.int32)])

    ids_blocked = N_pad * 4 > _SMEM_WHOLE_IDS_BYTES

    if path in ("onehot", "gather"):
        onehot_tmp = 2 * T * n_token * itemsize if path == "onehot" else 0

        def need(cols, table_bufs):
            # table slab + double-buffered output tile (+ one-hot temp).
            return (table_bufs * n_token + 2 * T) * cols * itemsize + onehot_tmp

        if need(d_model, 2) <= vmem_budget_bytes:
            d_chunk, table_bufs = d_model, 2          # default double-buffering
        elif need(d_model, 1) <= vmem_budget_bytes:
            d_chunk, table_bufs = d_model, 1          # single-buffer the slab
        else:
            cols = (vmem_budget_bytes - onehot_tmp) // ((n_token + 2 * T) * itemsize)
            d_chunk = int(min(d_model, max(_LANE, (cols // _LANE) * _LANE)))
            table_bufs = 1
        num_chunks = pl.cdiv(d_model, d_chunk)

        table_kwargs = {}
        if table_bufs == 1:
            # The slab's block index never changes within a column chunk, so
            # double-buffering it only wastes VMEM; single-buffering roughly
            # doubles the usable d_chunk (matters most on v7x's 64 MiB VMEM).
            table_kwargs["pipeline_mode"] = pl.Buffered(1)
        table_spec = pl.BlockSpec((n_token, d_chunk), lambda c, i: (0, c),
                                  **table_kwargs)
        out_spec = pl.BlockSpec((T, d_chunk), lambda c, i: (i, c))

        if path == "onehot":
            ids_arr = flat_idx.reshape(N_pad, 1)
            ids_spec = pl.BlockSpec((T, 1), lambda c, i: (i, 0))
            kernel = functools.partial(_embed_onehot_kernel, scale=scale)
        else:
            ids_arr = flat_idx
            if ids_blocked:
                # Per-block SMEM windows: SMEM never limits B*S.
                ids_spec = pl.BlockSpec((T,), lambda c, i: (i,),
                                        memory_space=pltpu.MemorySpace.SMEM)
            else:
                ids_spec = pl.BlockSpec(memory_space=pltpu.MemorySpace.SMEM)
            unroll = 8 if d_chunk <= 1024 else 4       # bound vreg pressure
            kernel = functools.partial(_embed_gather_kernel, scale=scale,
                                       unroll=unroll, ids_blocked=ids_blocked,
                                       token_axis=1)

        vmem_limit = int(max(32 << 20, need(d_chunk, table_bufs) + (4 << 20)))
        # TODO(synk): on v7x, when table bytes >> output bytes, shard d_model
        # columns across the two TensorCores instead of token blocks so each
        # core only reads half the table from HBM.
        out_flat = pl.pallas_call(
            kernel,
            out_shape=jax.ShapeDtypeStruct((N_pad, d_model), dtype),
            grid=(num_chunks, num_blocks),
            in_specs=[ids_spec, table_spec],
            out_specs=out_spec,
            compiler_params=pltpu.CompilerParams(
                dimension_semantics=("parallel", "parallel"),
                vmem_limit_bytes=vmem_limit),
        )(ids_arr, table)

    else:  # path == "dma"
        nbuf = min(8, T)
        if ids_blocked:
            ids_spec = pl.BlockSpec((T,), lambda i: (i,),
                                    memory_space=pltpu.MemorySpace.SMEM)
        else:
            ids_spec = pl.BlockSpec(memory_space=pltpu.MemorySpace.SMEM)
        table_spec = pl.BlockSpec(memory_space=pl.ANY)   # rows DMA'd on demand
        out_spec = pl.BlockSpec((T, d_model), lambda i: (i, 0))
        kernel = functools.partial(_embed_dma_kernel, scale=scale, nbuf=nbuf,
                                   ids_blocked=ids_blocked)
        vmem_limit = int(max(32 << 20,
                             (nbuf + 2 * T) * d_model * itemsize + (4 << 20)))
        out_flat = pl.pallas_call(
            kernel,
            out_shape=jax.ShapeDtypeStruct((N_pad, d_model), dtype),
            grid=(num_blocks,),
            in_specs=[ids_spec, table_spec],
            out_specs=out_spec,
            scratch_shapes=[pltpu.VMEM((nbuf, 1, d_model), dtype),
                            pltpu.SemaphoreType.DMA((nbuf,))],
            compiler_params=pltpu.CompilerParams(
                dimension_semantics=("parallel",),
                vmem_limit_bytes=vmem_limit),
        )(flat_idx, table)

    out = out_flat if N_pad == N else out_flat[:N]
    return out.reshape(*lead_shape, d_model)


# --------------------------------------------------------------------------
# Self-test
# --------------------------------------------------------------------------

if __name__ == "__main__":
    n_token, d_model = 64, 128
    key = jax.random.PRNGKey(0)
    k_table, k_idx = jax.random.split(key)

    # Deterministic parameter init (nn.Embedding weight ~ N(0, 1)).
    table = jax.random.normal(k_table, (n_token, d_model), dtype=jnp.float32)
    scale = jnp.float32(math.sqrt(d_model))

    def ref_fn(idx):
        return (jnp.take(table, idx.reshape(-1), axis=0)
                .reshape(*idx.shape, d_model) * scale)

    def check(idx, **kw):
        out = jax.block_until_ready(embeddings_forward(idx, table, **kw))
        expect = ref_fn(idx)
        assert out.shape == expect.shape, (out.shape, expect.shape, kw)
        assert out.dtype == jnp.float32
        assert jnp.allclose(out, expect, atol=1e-5, rtol=1e-5), f"mismatch: {kw}"

    # Module-consistent small shape: batch=2, seq=8.
    x = jax.random.randint(k_idx, (2, 8), 0, n_token, dtype=jnp.int32)
    check(x)                         # default dispatch -> one-hot MXU path
    check(x, force_path="gather")    # resident-slab row-gather path
    check(x, force_path="dma")       # manual HBM row-gather (DMA) path

    # Multi-token-block grid coverage.
    x_multi = jax.random.randint(jax.random.PRNGKey(1), (2, 384), 0, n_token,
                                 dtype=jnp.int32)
    check(x_multi)
    check(x_multi, force_path="gather")
    check(x_multi, force_path="dma")

    # Token count not a multiple of 8 (tail pad + output slice).
    x_ragged = jax.random.randint(jax.random.PRNGKey(2), (3, 5), 0, n_token,
                                  dtype=jnp.int32)
    check(x_ragged)

    print("KERNEL_OK")
</pallas_src>

<mosaic_0001>
module attributes {stable_mosaic.version = 11 : i64} {
  func.func @_embed_onehot_kernel(%arg0: i32, %arg1: i32, %arg2: memref<16x1xi32, #tpu.memory_space<vmem>>, %arg3: memref<64x128xf32, #tpu.memory_space<vmem>>, %arg4: memref<16x128xf32, #tpu.memory_space<vmem>>) attributes {dimension_semantics = [#tpu.dimension_semantics<parallel>, #tpu.dimension_semantics<parallel>], iteration_bounds = array<i64: 1, 1>, scalar_prefetch = 0 : i64, scratch_operands = 0 : i64, tpu.core_type = #tpu.core_type<tc>, window_params = [{transform_indices = @transform_0, window_bounds = array<i64: 16, 1>}, {transform_indices = @transform_1, window_bounds = array<i64: 64, 128>}, {transform_indices = @transform_2, window_bounds = array<i64: 16, 128>}]} {
    %c0 = arith.constant 0 : index
    %c0_0 = arith.constant 0 : index
    %0 = vector.load %arg2[%c0, %c0_0] : memref<16x1xi32, #tpu.memory_space<vmem>>, vector<16x1xi32>
    %1 = tpu.iota {dimensions = array<i32: 1>} : vector<16x64xi32>
    %2 = vector.broadcast %0 : vector<16x1xi32> to vector<16x64xi32>
    %3 = arith.cmpi eq, %1, %2 : vector<16x64xi32>
    %4 = arith.extui %3 : vector<16x64xi1> to vector<16x64xi32>
    %5 = arith.sitofp %4 : vector<16x64xi32> to vector<16x64xf32>
    %c0_1 = arith.constant 0 : index
    %c0_2 = arith.constant 0 : index
    %6 = vector.load %arg3[%c0_1, %c0_2] : memref<64x128xf32, #tpu.memory_space<vmem>>, vector<64x128xf32>
    %cst = arith.constant dense<0.000000e+00> : vector<16x128xf32>
    %7 = tpu.matmul %5, %6, %cst {dimension_numbers = #tpu.dot_dimension_numbers<[1], [0], [0], [1], [0, 0, 1, 1], [], []>} : vector<16x64xf32>, vector<64x128xf32>, vector<16x128xf32> -> vector<16x128xf32>
    %cst_3 = arith.constant 11.3137083 : f32
    %8 = vector.broadcast %cst_3 : f32 to vector<16x128xf32>
    %9 = arith.mulf %7, %8 : vector<16x128xf32>
    %c0_4 = arith.constant 0 : index
    %c0_5 = arith.constant 0 : index
    %10 = vector.load %arg4[%c0_4, %c0_5] : memref<16x128xf32, #tpu.memory_space<vmem>>, vector<16x128xf32>
    tpu.vector_store %arg4[%c0_4, %c0_5], %9 {strides = array<i32>} : memref<16x128xf32, #tpu.memory_space<vmem>>, vector<16x128xf32>,
    return
  }
  func.func @transform_0(%arg0: i32, %arg1: i32) -> (i32, i32) {
    %c0_i32 = arith.constant 0 : i32
    %c0_i32_0 = arith.constant 0 : i32
    return %arg1, %c0_i32 : i32, i32
  }
  func.func @transform_1(%arg0: i32, %arg1: i32) -> (i32, i32) {
    %c0_i32 = arith.constant 0 : i32
    %c0_i32_0 = arith.constant 0 : i32
    return %c0_i32, %arg0 : i32, i32
  }
  func.func @transform_2(%arg0: i32, %arg1: i32) -> (i32, i32) {
    %c0_i32 = arith.constant 0 : i32
    return %arg1, %arg0 : i32, i32
  }
}

</mosaic_0001>

<bundles_post_ra>
// kernel: tpu_custom_call.1
= control target key start
LH: loop header
LB: loop body
LE: loop exit
PB: predicated region body
PF: predicated region fallthrough
CT: control target
= control target key end

     0   :  { %7 = vsyncpa [#allocation3], 0  ;;  %s314_s0 = inlined_call_operand.vmem [shape: s32[16,1], index: 0, kind: input, shape index: {}]   ;;  %s315_s1 = inlined_call_operand.hbm [shape: f32[64,128], index: 1, kind: input, shape index: {}]   ;;  %s316_s2 = inlined_call_operand.hbm [shape: f32[16,128], index: 2, kind: output, shape index: {}]  }
   0x1   :  { %8 = vsyncpa [#allocation4], 0  ;;  %s257_s9 = smov [#allocation2]   ;;  %s209_s13 = scalar_lea.hbm %s315_s1, 1024 }
   0x2   :  { %s16_s10 = sshll.u32 %s257_s9, 4  ;;  %p210_p0 = scmp.ne.s32.totalorder %s315_s1, %s209_s13  ;;  %s17_s10 = int_to_ptr.vmem [resolvable:$true] %s16_s10 }
   0x3   :  { %p213_p1 = scmp.lt.u32.totalorder %s209_s13, %s315_s1 }
   0x5   :  { %p215_p2 = pnand %p213_p1, %p210_p0 }
   0x7   :  { %218 = shalt.err (!%p215_p2)
}
   0x8   :  { %s219_s18 = scalar_lea.vmem %s17_s10, 1024  ;;  %p224_p4 = scmp.lt.s32.totalorder %s17_s10, %s17_s10 }
   0x9   :  { %p220_p3 = scmp.ne.s32.totalorder %s17_s10, %s219_s18  ;;  %p225_p5 = scmp.lt.s32.totalorder %s219_s18, %s219_s18 }
   0xb   :  { %p226_p6 = por %p225_p5, %p224_p4 }
   0xd   :  { %p227_p7 = pnand %p226_p6, %p220_p3 }
   0xf   :  { %230 = shalt.err (!%p227_p7)
}
  0x10   :  { %s258_s19 = smov 128   ;;  %s259_s20 = smov 8  }
  0x11   :  { %22 = dma.hbm_to_vmem [thread:$0]  %s315_s1, 1024, %s17_s10, [#allocation3], %s258_s19, %s258_s19, %s259_s20  }
  0x12   :  { %253 = dma.done.wait [#allocation3], 1024  }
  0x13   :  { %254 = vsyncadd [#allocation3], 4294966272  ;;  %v260_v0 = vmov 0   ;;  %v26_v1 = vld [vmem:[%s314_s0] sm:$0xff]  ;;  %v43_v3 = vld [vmem:[#allocation2 + $0x8] sm:$0xff]  ;;  %v28_v15 = vlaneseq  ;;  %vm50_vm0 = vcmask 523264  }
  0x14   :  { %208 = vset.pattern.permute.xlu0 %v260_v0  ;;  %v42_v2 = vld [vmem:[#allocation2] sm:$0xff]  ;;  %v44_v4 = vld [vmem:[#allocation2 + $0x10] sm:$0xff]  ;;  %v45_v5 = vld [vmem:[#allocation2 + $0x18] sm:$0xff]  ;;  %v261_v18 = vmov 0.0  }
  0x15   :  { %31 = vperm.xlu0 %208, %v26_v1   ;;  %v27_v6 = vld [vmem:[%s314_s0 + $0x8] sm:$0xff]  ;;  %v186_v7 = vpack.c.bf16 %v43_v3, %v42_v2  ;;  %v190_v8 = vpack.c.bf16 %v45_v5, %v44_v4  ;;  %v46_v9 = vld [vmem:[#allocation2 + $0x20] sm:$0xff]  ;;  %v48_v12 = vld [vmem:[#allocation2 + $0x30] sm:$0xff]  ;;  %v29_v16 = vand.u32 127, %v28_v15  ;;  %s262_s0 = smov [#allocation5]  }
  0x16   :  { %v47_v10 = vld [vmem:[#allocation2 + $0x28] sm:$0xff]  ;;  %v49_v13 = vld [vmem:[#allocation2 + $0x38] sm:$0xff]  ;;  %s141_s1 = sshll.u32 %s262_s0, 4  ;;  %s142_s1 = int_to_ptr.vmem [resolvable:$true] %s141_s1 }
  0x17   :  { %187 = vmatprep.subr.bf16.mxu0 %v186_v7  ;;  %v194_v11 = vpack.c.bf16 %v47_v10, %v46_v9  ;;  %v198_v14 = vpack.c.bf16 %v49_v13, %v48_v12  ;;  %s231_s27 = scalar_lea.vmem %s142_s1, 256  ;;  %p236_p9 = scmp.lt.s32.totalorder %s142_s1, %s142_s1 }
  0x18   :  { %189 = vmatpush3.bf16.msra.mxu0 %v186_v7  ;;  %p232_p8 = scmp.ne.s32.totalorder %s142_s1, %s231_s27  ;;  %p237_p10 = scmp.lt.s32.totalorder %s231_s27, %s231_s27 }
  0x19   :  { %34 = vperm.xlu0 %208, %v27_v6   ;;  %191 = vmatprep.subr.bf16.mxu0 %v190_v8 }
  0x1a   :  { %p238_p11 = por %p237_p10, %p236_p9 }
  0x1c   :  { %193 = vmatpush3.bf16.msra.mxu0 %v190_v8  ;;  %p239_p12 = pnand %p238_p11, %p232_p8 }
  0x1d   :  { %195 = vmatprep.subr.bf16.mxu0 %v194_v11 }
  0x20   :  { %197 = vmatpush3.bf16.msra.mxu0 %v194_v11 }
  0x21   :  { %199 = vmatprep.subr.bf16.mxu0 %v198_v14 }
  0x24   :  { %201 = vmatpush3.bf16.msra.mxu0 %v198_v14 }
  0x94   :  { %v32_v17 = vpop.permute.xlu0 %31 }
  0x95   :  { %vm36_vm1 = vcmp.eq.s32.totalorder %v29_v16, %v32_v17 }
  0x96   :  { %v153_v19 = vsel %vm36_vm1, 1.0, %v261_v18 }
  0x97   :  { %183 = vmatprep.mubr.msk.f32.mxu0 %vm50_vm0, %v153_v19 }
  0x98   :  { %v35_v20 = vpop.permute.xlu0 %34 }
  0x99   :  { %vm37_vm2 = vcmp.eq.s32.totalorder %v29_v16, %v35_v20 }
  0x9a   :  { %v154_v21 = vsel %vm37_vm2, 1.0, %v261_v18 }
  0x9b   :  { %184 = vmatmul.mubr.msk.f32.vlgmr.msra.gmra.mrb[0].mxu0 %vm50_vm0, %v154_v21 }
 0x16e   :  { %v185_v22 = vpop.f32.mrb[0].mxu0 }
 0x16f   :  { %v133_v23 = vmul.f32 11.313708, %v185_v22  ;;  %v123_v24 = vpop.f32.mrb[1].mxu0 }
 0x170   :  { %v132_v25 = vmul.f32 11.313708, %v123_v24 }
 0x171   :  { %135 = vst [vmem:[#allocation5 + $0x8] sm:$0xff] %v133_v23 }
 0x172   :  { %134 = vst [vmem:[#allocation5] sm:$0xff] %v132_v25 }
 0x173   :  { %242 = shalt.err (!%p239_p12)
}
 0x174   :  { %s243_s30 = scalar_lea.hbm %s316_s2, 256 }
 0x175   :  { %p244_p13 = scmp.ne.s32.totalorder %s316_s2, %s243_s30  ;;  %p247_p0 = scmp.lt.u32.totalorder %s243_s30, %s316_s2 }
 0x177   :  { %p249_p1 = pnand %p247_p0, %p244_p13 }
 0x179   :  { %252 = shalt.err (!%p249_p1)
}
 0x17a   :  { %147 = dma.vmem_to_hbm [thread:$0]  %s142_s1, 256, %s316_s2, [#allocation4], %s258_s19, %s258_s19, %s259_s20  }
 0x17b   :  { %255 = dma.done.wait [#allocation4], 256  }
 0x17c   :  { %256 = vsyncadd [#allocation4], 4294967040 }
 0x17d   :  { %151 = vsyncpa [#allocation3], 1 }
 0x17e   :  { %152 = vsyncpa [#allocation4], 1 }

</bundles_post_ra>
